<compile_context>
chip_gen: v7x
topology: tpu7x:2x2x1
jax: 0.10.0
libtpu: 0.0.40
codegen_flags: <defaults>
</compile_context>

<pallas_src>
import functools

import jax
import jax.numpy as jnp
from jax import lax
from jax.experimental import pallas as pl
from jax.experimental.pallas import tpu as pltpu


def _round_up(x, m):
    return (x + m - 1) // m * m


def _pick_divisor_tile(rows, cap=256):
    for t in (256, 128, 64, 32, 16, 8):
        if t <= cap and rows % t == 0:
            return t
    return rows


def _pick_tq(n, cap=256):
    """Largest MXU-friendly query tile that still yields >= 2 query tiles."""
    n8 = _round_up(max(n, 8), 8)
    for t in (256, 128, 64, 32, 16, 8):
        if t <= cap and 2 * t <= n8:
            return t
    return min(cap, n8)


# --------------------------------------------------------------------------
# Helper kernel: row-wise L2 normalization (done once per matrix).
# --------------------------------------------------------------------------
def _l2norm_rows_kernel(x_ref, o_ref, *, eps):
    x = x_ref[...].astype(jnp.float32)
    inv = lax.rsqrt(jnp.sum(x * x, axis=1, keepdims=True) + eps)
    o_ref[...] = (x * inv).astype(o_ref.dtype)
    # TODO(synk): F.normalize clamps the norm itself to eps; rsqrt(sumsq+eps)
    # differs only for near-zero-norm rows (padded rows, which are dropped).


def _l2norm_rows(x, *, out_dtype):
    rows, d = x.shape
    tile = _pick_divisor_tile(rows)
    return pl.pallas_call(
        functools.partial(_l2norm_rows_kernel, eps=1e-12),
        out_shape=jax.ShapeDtypeStruct((rows, d), out_dtype),
        grid_spec=pltpu.PrefetchScalarGridSpec(
            num_scalar_prefetch=0,
            grid=(rows // tile,),
            in_specs=[pl.BlockSpec((tile, d), lambda i: (i, 0))],
            out_specs=pl.BlockSpec((tile, d), lambda i: (i, 0)),
        ),
        compiler_params=pltpu.CompilerParams(dimension_semantics=("parallel",)),
    )(x)


# --------------------------------------------------------------------------
# Main kernel: one (TQ, TK) tile of the fused [pred | sim] logits per step,
# masked and folded into an online (flash-style) log-sum-exp.
# --------------------------------------------------------------------------
def _proxy_ploss_kernel(lhs_ref, rhs_ref, lbl_ref, tag_ref, thr_ref, out_ref,
                        m_ref, l_ref, corr_ref, *, tk, c_pad, scale, resident):
    k = pl.program_id(1)

    @pl.when(k == 0)
    def _():
        m_ref[...] = jnp.full_like(m_ref, -1e30)   # large-negative finite init
        l_ref[...] = jnp.zeros_like(l_ref)
        corr_ref[...] = jnp.zeros_like(corr_ref)

    if resident:
        # RHS lives fully in VMEM; slice the current key tile (sublane-aligned).
        rhs = rhs_ref[pl.ds(pl.multiple_of(k * tk, tk), tk), :]
    else:
        rhs = rhs_ref[...]

    # One fused MXU pass (bf16 operands, f32 accumulation):
    #   feat_norm tile  @  [proxy_norm ; feat_norm] tile.T
    raw = lax.dot_general(lhs_ref[...], rhs, (((1,), (1,)), ((), ())),
                          preferred_element_type=jnp.float32)     # (TQ, TK) f32

    tag = tag_ref[...]      # (1, TK) int32: -1 class col, -2 padded feature col,
                            #                >=0 feature col carrying its label
    thr = thr_ref[...]      # (1, TK) f32:  -inf class, +inf padding, 1e-6 sim
    t_q = lbl_ref[...]      # (TQ, 1) int32: query labels (-1 for padded rows)

    # Single fused mask: same-label sim column OR below the per-column
    # threshold (padding columns have thr=+inf -> always masked; class columns
    # have thr=-inf -> never threshold-masked).  Threshold compares the
    # UNSCALED f32 logits, matching the reference `sim < 1e-6`.
    masked = (t_q == tag) | (raw < thr)
    s = jnp.where(masked, -jnp.inf, raw * jnp.float32(scale))

    # Online log-sum-exp update.
    m_prev = m_ref[...]
    m_new = jnp.maximum(m_prev, jnp.max(s, axis=1, keepdims=True))
    alpha = jnp.exp(m_prev - m_new)
    l_ref[...] = alpha * l_ref[...] + jnp.sum(
        jnp.exp(s - m_new), axis=1, keepdims=True)
    m_ref[...] = m_new

    # Target-class logit lives in the class block (global columns [0, c_pad)).
    @pl.when(k * tk < c_pad)
    def _():
        col = k * tk + lax.broadcasted_iota(jnp.int32, s.shape, 1)
        corr_ref[...] += jnp.sum(
            jnp.where(col == t_q, s, 0.0), axis=1, keepdims=True)

    @pl.when(k == pl.num_programs(1) - 1)
    def _():
        out_ref[...] = (m_ref[...] + jnp.log(l_ref[...])) - corr_ref[...]


# --------------------------------------------------------------------------
# Wrapper.
# --------------------------------------------------------------------------
def proxy_ploss(feature, target, proxy, scale, *, tq=None, tk=None,
                matmul_dtype=jnp.bfloat16):
    """ProxyPLoss forward (mean NLL over the batch)."""
    n, d = feature.shape
    c = proxy.shape[0]
    f32 = jnp.float32
    itemsize = jnp.dtype(matmul_dtype).itemsize

    # ---- tile selection --------------------------------------------------
    if tq is None:
        tq = _pick_tq(n)                        # >= 2 query tiles when possible
    if tk is None:
        tk = 256 if max(c, n) >= 256 else 128   # 256-wide fills v6e/v7x MXU
    d_pad = _round_up(max(d, 128), 128)         # lanes (contraction dim)
    n_q_pad = _round_up(max(n, tq), tq)         # query rows
    c_pad = _round_up(max(c, tk), tk)           # class block
    n_k_pad = _round_up(max(n, tk), tk)         # feature key block
    k_total = c_pad + n_k_pad
    n_feat_pad = max(n_q_pad, n_k_pad)

    # ---- hoisted L2 normalization: each matrix normalized exactly once ----
    feat_p = jnp.zeros((n_feat_pad, d_pad), f32).at[:n, :d].set(feature.astype(f32))
    prox_p = jnp.zeros((c_pad, d_pad), f32).at[:c, :d].set(proxy.astype(f32))
    feat_n = _l2norm_rows(feat_p, out_dtype=matmul_dtype)
    prox_n = _l2norm_rows(prox_p, out_dtype=matmul_dtype)
    lhs = feat_n[:n_q_pad]                                     # query rows
    rhs = jnp.concatenate([prox_n, feat_n[:n_k_pad]], axis=0)  # fused keys

    # ---- per-column tag / threshold tables (host-side, tiny) --------------
    t = target.astype(jnp.int32)
    lbl_col = jnp.full((n_q_pad, 1), -1, jnp.int32).at[:n, 0].set(t)
    col_c = jnp.arange(c_pad)
    col_f = jnp.arange(n_k_pad)
    tags = jnp.concatenate([
        jnp.full((c_pad,), -1, jnp.int32),
        jnp.where(col_f < n,
                  jnp.zeros((n_k_pad,), jnp.int32).at[:n].set(t),
                  -2).astype(jnp.int32),
    ]).reshape(1, k_total)
    thr = jnp.concatenate([
        jnp.where(col_c < c, -jnp.inf, jnp.inf).astype(f32),
        jnp.where(col_f < n, jnp.float32(1e-6), jnp.inf).astype(f32),
    ]).reshape(1, k_total)

    # ---- RHS residency decision + VMEM budget (v7x cap: 48 MiB) -----------
    resident = 2 * k_total * d_pad * itemsize <= 16 * 1024 * 1024
    rhs_rows = k_total if resident else tk
    grid = (n_q_pad // tq, k_total // tk)
    rhs_spec = (pl.BlockSpec((k_total, d_pad), lambda q, k: (0, 0)) if resident
                else pl.BlockSpec((tk, d_pad), lambda q, k: (k, 0)))

    vmem_need = (2 * tq * d_pad * itemsize          # lhs (double-buffered)
                 + 2 * rhs_rows * d_pad * itemsize  # rhs (count 2x to be safe)
                 + 2 * tq * 128 * 4                 # labels block (lane-padded)
                 + 2 * 2 * 8 * tk * 4               # tags + thr blocks
                 + 2 * tq * 128 * 4                 # output block
                 + 3 * tq * 128 * 4                 # LSE scratch
                 + 6 * tq * tk * 4)                 # logits / mask temporaries
    vmem_limit = int(min(48 * 1024 * 1024, vmem_need + 4 * 1024 * 1024))

    kernel = functools.partial(_proxy_ploss_kernel, tk=tk, c_pad=c_pad,
                               scale=float(scale), resident=resident)

    rhs_passes = 1 if resident else grid[0]
    cost = pl.CostEstimate(
        flops=2 * n_q_pad * k_total * d_pad,
        transcendentals=n_q_pad * k_total,
        bytes_accessed=int(itemsize * (n_q_pad * d_pad
                                       + rhs_passes * k_total * d_pad)
                           + 4 * (2 * n_q_pad + 2 * k_total)))

    per_example = pl.pallas_call(
        kernel,
        out_shape=jax.ShapeDtypeStruct((n_q_pad, 1), f32),
        grid_spec=pltpu.PrefetchScalarGridSpec(
            num_scalar_prefetch=0,
            grid=grid,
            in_specs=[
                pl.BlockSpec((tq, d_pad), lambda q, k: (q, 0)),   # query rows
                rhs_spec,                                          # fused keys
                pl.BlockSpec((tq, 1),     lambda q, k: (q, 0)),   # query labels
                pl.BlockSpec((1, tk),     lambda q, k: (0, k)),   # column tags
                pl.BlockSpec((1, tk),     lambda q, k: (0, k)),   # column thresholds
            ],
            out_specs=pl.BlockSpec((tq, 1), lambda q, k: (q, 0)),
            scratch_shapes=[pltpu.VMEM((tq, 1), f32),   # running max
                            pltpu.VMEM((tq, 1), f32),   # running sum-exp
                            pltpu.VMEM((tq, 1), f32)],  # target logit
        ),
        compiler_params=pltpu.CompilerParams(
            dimension_semantics=("parallel", "arbitrary"),
            vmem_limit_bytes=vmem_limit),
        cost_estimate=cost,
    )(lhs, rhs, lbl_col, tags, thr)

    return jnp.sum(per_example[:n, 0]) / n


# --------------------------------------------------------------------------
# Pure-JAX reference (mirrors the PyTorch module).
# --------------------------------------------------------------------------
def _reference_loss(feature, target, proxy, scale):
    f = feature / jnp.linalg.norm(feature, axis=1, keepdims=True)
    p = proxy / jnp.linalg.norm(proxy, axis=1, keepdims=True)
    pred = f @ p.T
    sim = f @ f.T
    lm = target[:, None] == target[None, :]
    sim = sim * jnp.logical_not(lm)
    sim = jnp.where(sim < 1e-6, -jnp.inf, sim)
    logits = jnp.concatenate([pred, sim], axis=1)
    logp = jax.nn.log_softmax(scale * logits, axis=1)
    return -jnp.mean(logp[jnp.arange(target.shape[0]), target])


if __name__ == "__main__":
    num_classes = 4
    scale = 12.0
    batch = 16
    feat_dim = 32

    key = jax.random.PRNGKey(0)
    k_feat, k_proxy, k_tgt = jax.random.split(key, 3)
    feature = jax.random.normal(k_feat, (batch, feat_dim), dtype=jnp.float32)
    proxy = jax.random.normal(k_proxy, (num_classes, feat_dim), dtype=jnp.float32)
    target = jax.random.randint(k_tgt, (batch,), 0, num_classes, dtype=jnp.int32)

    ref = _reference_loss(feature, target, proxy, scale)

    # Default (bf16 MXU operands, f32 accumulation): fast path; tolerance is
    # loose because bf16 rounding can perturb similarities near the 1e-6 mask
    # threshold (documented divergence from the f32 reference).
    loss_bf16 = proxy_ploss(feature, target, proxy, scale)
    jax.block_until_ready(loss_bf16)
    assert jnp.isfinite(loss_bf16)
    assert jnp.allclose(loss_bf16, ref, rtol=0.1, atol=0.1), (loss_bf16, ref)

    # f32 operands: bit-faithful check against the reference.
    loss_f32 = proxy_ploss(feature, target, proxy, scale,
                           matmul_dtype=jnp.float32)
    jax.block_until_ready(loss_f32)
    assert jnp.allclose(loss_f32, ref, rtol=1e-4, atol=1e-4), (loss_f32, ref)

    print("KERNEL_OK")
</pallas_src>

<mosaic_0001>
module attributes {stable_mosaic.version = 11 : i64} {
  func.func @_l2norm_rows_kernel(%arg0: i32, %arg1: memref<128x128xf32, #tpu.memory_space<vmem>>, %arg2: memref<128x128xbf16, #tpu.memory_space<vmem>>) attributes {dimension_semantics = [#tpu.dimension_semantics<parallel>], iteration_bounds = array<i64: 1>, scalar_prefetch = 0 : i64, scratch_operands = 0 : i64, tpu.core_type = #tpu.core_type<tc>, window_params = [{transform_indices = @transform_0, window_bounds = array<i64: 128, 128>}, {transform_indices = @transform_1, window_bounds = array<i64: 128, 128>}]} {
    %c0 = arith.constant 0 : index
    %c0_0 = arith.constant 0 : index
    %0 = vector.load %arg1[%c0, %c0_0] : memref<128x128xf32, #tpu.memory_space<vmem>>, vector<128x128xf32>
    %1 = arith.mulf %0, %0 : vector<128x128xf32>
    %cst = arith.constant dense<0.000000e+00> : vector<128xf32>
    %2 = vector.multi_reduction <add>, %1, %cst [1] : vector<128x128xf32> to vector<128xf32>
    %3 = vector.shape_cast %2 : vector<128xf32> to vector<128x1xf32>
    %cst_1 = arith.constant 9.99999996E-13 : f32
    %4 = vector.broadcast %cst_1 : f32 to vector<128x1xf32>
    %5 = arith.addf %3, %4 : vector<128x1xf32>
    %6 = math.rsqrt %5 : vector<128x1xf32>
    %7 = vector.broadcast %6 : vector<128x1xf32> to vector<128x128xf32>
    %8 = arith.mulf %0, %7 : vector<128x128xf32>
    %9 = arith.truncf %8 : vector<128x128xf32> to vector<128x128xbf16>
    %c0_2 = arith.constant 0 : index
    %c0_3 = arith.constant 0 : index
    %10 = vector.load %arg2[%c0_2, %c0_3] : memref<128x128xbf16, #tpu.memory_space<vmem>>, vector<128x128xbf16>
    tpu.vector_store %arg2[%c0_2, %c0_3], %9 {strides = array<i32>} : memref<128x128xbf16, #tpu.memory_space<vmem>>, vector<128x128xbf16>,
    return
  }
  func.func @transform_0(%arg0: i32) -> (i32, i32) {
    %c0_i32 = arith.constant 0 : i32
    %c0_i32_0 = arith.constant 0 : i32
    return %arg0, %c0_i32 : i32, i32
  }
  func.func @transform_1(%arg0: i32) -> (i32, i32) {
    %c0_i32 = arith.constant 0 : i32
    %c0_i32_0 = arith.constant 0 : i32
    return %arg0, %c0_i32 : i32, i32
  }
}

</mosaic_0001>

<bundles_post_ra>
// kernel: tpu_custom_call.1
= control target key start
LH: loop header
LB: loop body
LE: loop exit
PB: predicated region body
PF: predicated region fallthrough
CT: control target
= control target key end

     0   :  { %6 = vsyncpa [#allocation3], 0  ;;  %s517_s0 = inlined_call_operand.hbm [shape: f32[128,128], index: 0, kind: input, shape index: {}]   ;;  %s518_s1 = inlined_call_operand.hbm [shape: bf16[128,128], index: 1, kind: output, shape index: {}]  }
   0x1   :  { %7 = vsyncpa [#allocation4], 0  ;;  %s397_s6 = smov [#allocation2]   ;;  %s349_s10 = scalar_lea.hbm %s517_s0, 2048 }
   0x2   :  { %s13_s7 = sshll.u32 %s397_s6, 4  ;;  %p350_p0 = scmp.ne.s32.totalorder %s517_s0, %s349_s10  ;;  %s14_s7 = int_to_ptr.vmem [resolvable:$true] %s13_s7 }
   0x3   :  { %p353_p1 = scmp.lt.u32.totalorder %s349_s10, %s517_s0 }
   0x5   :  { %p355_p2 = pnand %p353_p1, %p350_p0 }
   0x7   :  { %358 = shalt.err (!%p355_p2)
}
   0x8   :  { %s359_s15 = scalar_lea.vmem %s14_s7, 2048  ;;  %p364_p4 = scmp.lt.s32.totalorder %s14_s7, %s14_s7 }
   0x9   :  { %p360_p3 = scmp.ne.s32.totalorder %s14_s7, %s359_s15  ;;  %p365_p5 = scmp.lt.s32.totalorder %s359_s15, %s359_s15 }
   0xb   :  { %p366_p6 = por %p365_p5, %p364_p4 }
   0xd   :  { %p367_p7 = pnand %p366_p6, %p360_p3 }
   0xf   :  { %370 = shalt.err (!%p367_p7)
}
  0x10   :  { %s398_s16 = smov 128   ;;  %s399_s17 = smov 8  }
  0x11   :  { %19 = dma.hbm_to_vmem [thread:$0]  %s517_s0, 2048, %s14_s7, [#allocation3], %s398_s16, %s398_s16, %s399_s17  }
  0x12   :  { %393 = dma.done.wait [#allocation3], 2048  }
  0x13   :  { %394 = vsyncadd [#allocation3], 4294965248  ;;  %v425_v0 = vld [vmem:[#allocation2 + $0x10] sm:$0xff]  ;;  %v427_v1 = vld [vmem:[#allocation2] sm:$0xff]  ;;  %s400_s0 = smov [#allocation5]  }
  0x14   :  { %v429_v2 = vld [vmem:[#allocation2 + $0x18] sm:$0xff]  ;;  %v41_v3 = vmul.f32 %v425_v0, %v425_v0  ;;  %v39_v4 = vmul.f32 %v427_v1, %v427_v1  ;;  %v435_v5 = vld [vmem:[#allocation2 + $0x8] sm:$0xff]  ;;  %v443_v9 = vld [vmem:[#allocation2 + $0x20] sm:$0xff]  ;;  %s220_s20 = sshll.u32 %s400_s0, 4  ;;  %s221_s20 = int_to_ptr.vmem [resolvable:$true] %s220_s20 }
  0x15   :  { %v42_v6 = vmul.f32 %v429_v2, %v429_v2  ;;  %v40_v7 = vmul.f32 %v435_v5, %v435_v5  ;;  %v441_v8 = vld [vmem:[#allocation2 + $0x28] sm:$0xff]  ;;  %v43_v11 = vmul.f32 %v443_v9, %v443_v9  ;;  %v449_v12 = vld [vmem:[#allocation2 + $0x38] sm:$0xff]  ;;  %v451_v13 = vld [vmem:[#allocation2 + $0x30] sm:$0xff]  ;;  %s371_s21 = scalar_lea.vmem %s221_s20, 1024  ;;  %p376_p9 = scmp.lt.s32.totalorder %s221_s20, %s221_s20 }
  0x16   :  { %59 = vadd.xlane.f32.xlu1 %v41_v3  ;;  %55 = vadd.xlane.f32.xlu0 %v39_v4  ;;  %v44_v10 = vmul.f32 %v441_v8, %v441_v8  ;;  %v46_v14 = vmul.f32 %v449_v12, %v449_v12  ;;  %v45_v15 = vmul.f32 %v451_v13, %v451_v13  ;;  %v457_v16 = vld [vmem:[#allocation2 + $0x48] sm:$0xff]  ;;  %v459_v17 = vld [vmem:[#allocation2 + $0x40] sm:$0xff]  ;;  %v465_v20 = vld [vmem:[#allocation2 + $0x58] sm:$0xff]  ;;  %p372_p8 = scmp.ne.s32.totalorder %s221_s20, %s371_s21  ;;  %p377_p10 = scmp.lt.s32.totalorder %s371_s21, %s371_s21 }
  0x17   :  { %v48_v18 = vmul.f32 %v457_v16, %v457_v16  ;;  %v47_v19 = vmul.f32 %v459_v17, %v459_v17  ;;  %v467_v21 = vld [vmem:[#allocation2 + $0x50] sm:$0xff]  ;;  %v50_v22 = vmul.f32 %v465_v20, %v465_v20  ;;  %v473_v24 = vld [vmem:[#allocation2 + $0x68] sm:$0xff]  ;;  %v475_v25 = vld [vmem:[#allocation2 + $0x60] sm:$0xff] }
  0x18   :  { %v49_v23 = vmul.f32 %v467_v21, %v467_v21  ;;  %v52_v26 = vmul.f32 %v473_v24, %v473_v24  ;;  %v51_v27 = vmul.f32 %v475_v25, %v475_v25  ;;  %v481_v28 = vld [vmem:[#allocation2 + $0x78] sm:$0xff]  ;;  %v483_v29 = vld [vmem:[#allocation2 + $0x70] sm:$0xff]  ;;  %p378_p11 = por %p377_p10, %p376_p9 }
  0x19   :  { %v54_v30 = vmul.f32 %v481_v28, %v481_v28  ;;  %v53_v31 = vmul.f32 %v483_v29, %v483_v29 }
  0x1a   :  { %61 = vadd.xlane.f32.xlu1 %v42_v6  ;;  %57 = vadd.xlane.f32.xlu0 %v40_v7  ;;  %p379_p12 = pnand %p378_p11, %p372_p8 }
  0x1e   :  { %65 = vadd.xlane.f32.xlu1 %v44_v10  ;;  %63 = vadd.xlane.f32.xlu0 %v43_v11 }
  0x22   :  { %69 = vadd.xlane.f32.xlu1 %v46_v14  ;;  %67 = vadd.xlane.f32.xlu0 %v45_v15 }
  0x26   :  { %73 = vadd.xlane.f32.xlu1 %v48_v18  ;;  %71 = vadd.xlane.f32.xlu0 %v47_v19 }
  0x2a   :  { %77 = vadd.xlane.f32.xlu1 %v50_v22  ;;  %75 = vadd.xlane.f32.xlu0 %v49_v23 }
  0x2e   :  { %81 = vadd.xlane.f32.xlu1 %v52_v26  ;;  %79 = vadd.xlane.f32.xlu0 %v51_v27 }
  0x32   :  { %85 = vadd.xlane.f32.xlu1 %v54_v30  ;;  %83 = vadd.xlane.f32.xlu0 %v53_v31 }
  0xa3   :  { %v60_v32 = vpop.xlane.xlu1 %59  ;;  %v56_v33 = vpop.xlane.xlu0 %55 }
  0xa4   :  { %v89_v34 = vadd.f32 1e-12, %v60_v32  ;;  %v87_v35 = vadd.f32 1e-12, %v56_v33 }
  0xa6   :  { %317 = vrsqrt.f32 %v89_v34 }
  0xa7   :  { %v62_v36 = vpop.xlane.xlu1 %61  ;;  %v58_v37 = vpop.xlane.xlu0 %57  ;;  %319 = vrsqrt.f32 %v87_v35 }
  0xa8   :  { %v90_v38 = vadd.f32 1e-12, %v62_v36  ;;  %v88_v39 = vadd.f32 1e-12, %v58_v37 }
  0xaa   :  { %321 = vrsqrt.f32 %v90_v38 }
  0xab   :  { %323 = vrsqrt.f32 %v88_v39  ;;  %v66_v40 = vpop.xlane.xlu1 %65  ;;  %v64_v41 = vpop.xlane.xlu0 %63 }
  0xac   :  { %v92_v42 = vadd.f32 1e-12, %v66_v40  ;;  %v91_v43 = vadd.f32 1e-12, %v64_v41 }
  0xae   :  { %325 = vrsqrt.f32 %v92_v42 }
  0xaf   :  { %327 = vrsqrt.f32 %v91_v43  ;;  %v70_v44 = vpop.xlane.xlu1 %69  ;;  %v68_v45 = vpop.xlane.xlu0 %67 }
  0xb0   :  { %v94_v46 = vadd.f32 1e-12, %v70_v44  ;;  %v93_v47 = vadd.f32 1e-12, %v68_v45  ;;  %v318_v48 = vpop.eup %317 }
  0xb1   :  { %v320_v49 = vpop.eup %319  ;;  %v121_v56 = vmul.f32 %v318_v48, %v425_v0 }
  0xb2   :  { %329 = vrsqrt.f32 %v94_v46  ;;  %v119_v58 = vmul.f32 %v320_v49, %v427_v1 }
  0xb3   :  { %331 = vrsqrt.f32 %v93_v47  ;;  %v74_v50 = vpop.xlane.xlu1 %73  ;;  %v72_v51 = vpop.xlane.xlu0 %71 }
  0xb4   :  { %v322_v52 = vpop.eup %321  ;;  %v96_v53 = vadd.f32 1e-12, %v74_v50  ;;  %v95_v54 = vadd.f32 1e-12, %v72_v51 }
  0xb5   :  { %v324_v55 = vpop.eup %323  ;;  %v122_v57 = vmul.f32 %v322_v52, %v429_v2 }
  0xb6   :  { %v120_v59 = vmul.f32 %v324_v55, %v435_v5  ;;  %333 = vrsqrt.f32 %v96_v53 }
  0xb7   :  { %v272_v60 = vpack.c.bf16 %v122_v57, %v121_v56  ;;  %335 = vrsqrt.f32 %v95_v54  ;;  %v78_v61 = vpop.xlane.xlu1 %77  ;;  %v76_v62 = vpop.xlane.xlu0 %75 }
  0xb8   :  { %v326_v63 = vpop.eup %325  ;;  %v267_v3 = vpack.c.bf16 %v120_v59, %v119_v58  ;;  %v98_v4 = vadd.f32 1e-12, %v78_v61  ;;  %v97_v6 = vadd.f32 1e-12, %v76_v62 }
  0xb9   :  { %v328_v7 = vpop.eup %327  ;;  %304 = vst [vmem:[#allocation5 + $0x8] sm:$0xff] %v272_v60   ;;  %v124_v10 = vmul.f32 %v326_v63, %v441_v8 }
  0xba   :  { %268 = vst [vmem:[#allocation5] sm:$0xff] %v267_v3   ;;  %v123_v0 = vmul.f32 %v328_v7, %v443_v9  ;;  %337 = vrsqrt.f32 %v98_v4 }
  0xbb   :  { %339 = vrsqrt.f32 %v97_v6  ;;  %v82_v1 = vpop.xlane.xlu1 %81  ;;  %v80_v2 = vpop.xlane.xlu0 %79 }
  0xbc   :  { %v330_v5 = vpop.eup %329  ;;  %v277_v11 = vpack.c.bf16 %v124_v10, %v123_v0  ;;  %v100_v14 = vadd.f32 1e-12, %v82_v1  ;;  %v99_v15 = vadd.f32 1e-12, %v80_v2 }
  0xbd   :  { %v332_v18 = vpop.eup %331  ;;  %v126_v19 = vmul.f32 %v330_v5, %v449_v12 }
  0xbe   :  { %305 = vst [vmem:[#allocation5 + $0x10] sm:$0xff] %v277_v11   ;;  %v125_v22 = vmul.f32 %v332_v18, %v451_v13  ;;  %341 = vrsqrt.f32 %v100_v14 }
  0xbf   :  { %343 = vrsqrt.f32 %v99_v15  ;;  %v86_v8 = vpop.xlane.xlu1 %85  ;;  %v84_v23 = vpop.xlane.xlu0 %83 }
  0xc0   :  { %v334_v26 = vpop.eup %333  ;;  %v282_v9 = vpack.c.bf16 %v126_v19, %v125_v22  ;;  %v102_v27 = vadd.f32 1e-12, %v86_v8  ;;  %v101_v30 = vadd.f32 1e-12, %v84_v23 }
  0xc1   :  { %v336_v31 = vpop.eup %335  ;;  %v128_v32 = vmul.f32 %v334_v26, %v457_v16 }
  0xc2   :  { %306 = vst [vmem:[#allocation5 + $0x18] sm:$0xff] %v282_v9   ;;  %v127_v33 = vmul.f32 %v336_v31, %v459_v17  ;;  %345 = vrsqrt.f32 %v102_v27 }
  0xc3   :  { %347 = vrsqrt.f32 %v101_v30 }
  0xc4   :  { %v338_v12 = vpop.eup %337  ;;  %v287_v34 = vpack.c.bf16 %v128_v32, %v127_v33 }
  0xc5   :  { %v340_v35 = vpop.eup %339  ;;  %v130_v13 = vmul.f32 %v338_v12, %v465_v20 }
  0xc6   :  { %307 = vst [vmem:[#allocation5 + $0x20] sm:$0xff] %v287_v34   ;;  %v129_v36 = vmul.f32 %v340_v35, %v467_v21 }
  0xc8   :  { %v342_v37 = vpop.eup %341  ;;  %v292_v38 = vpack.c.bf16 %v130_v13, %v129_v36 }
  0xc9   :  { %v344_v39 = vpop.eup %343  ;;  %v132_v40 = vmul.f32 %v342_v37, %v473_v24 }
  0xca   :  { %308 = vst [vmem:[#allocation5 + $0x28] sm:$0xff] %v292_v38   ;;  %v131_v16 = vmul.f32 %v344_v39, %v475_v25 }
  0xcc   :  { %v346_v41 = vpop.eup %345  ;;  %v297_v17 = vpack.c.bf16 %v132_v40, %v131_v16 }
  0xcd   :  { %v348_v42 = vpop.eup %347  ;;  %v134_v43 = vmul.f32 %v346_v41, %v481_v28 }
  0xce   :  { %309 = vst [vmem:[#allocation5 + $0x30] sm:$0xff] %v297_v17   ;;  %v133_v20 = vmul.f32 %v348_v42, %v483_v29 }
  0xd0   :  { %v302_v21 = vpack.c.bf16 %v134_v43, %v133_v20 }
  0xd2   :  { %310 = vst [vmem:[#allocation5 + $0x38] sm:$0xff] %v302_v21  }
  0xd3   :  { %382 = shalt.err (!%p379_p12)
}
  0xd4   :  { %s383_s24 = scalar_lea.hbm %s518_s1, 1024 }
  0xd5   :  { %p384_p13 = scmp.ne.s32.totalorder %s518_s1, %s383_s24  ;;  %p387_p0 = scmp.lt.u32.totalorder %s383_s24, %s518_s1 }
  0xd7   :  { %p389_p1 = pnand %p387_p0, %p384_p13 }
  0xd9   :  { %392 = shalt.err (!%p389_p1)
}
  0xda   :  { %s401_s29 = smov 64   ;;  %s402_s30 = smov 4  }
  0xdb   :  { %226 = dma.vmem_to_hbm [thread:$0]  %s221_s20, 1024, %s518_s1, [#allocation4], %s401_s29, %s401_s29, %s402_s30  }
  0xdc   :  { %395 = dma.done.wait [#allocation4], 1024  }
  0xdd   :  { %396 = vsyncadd [#allocation4], 4294966272 }
  0xde   :  { %230 = vsyncpa [#allocation3], 1 }
  0xdf   :  { %231 = vsyncpa [#allocation4], 1 }

</bundles_post_ra>
